<compile_context>
chip_gen: v7x
topology: tpu7x:2x2x1
jax: 0.10.0
libtpu: 0.0.40
codegen_flags: <defaults>
</compile_context>

<pallas_src>
import jax
import jax.numpy as jnp
from jax.experimental import pallas as pl
from jax.experimental.pallas import tpu as pltpu


def se_kernel(x_ref, m1_ref, w2t_ref, exp_ref, o_ref):
    # x_ref block: (TB, C*L), lane-dense.  Weights / constant mats: full arrays.
    x = x_ref[...].astype(jnp.float32)                                    # (TB, C*L)
    # fused squeeze (per-channel mean) + first projection, then relu
    h = jnp.maximum(
        jnp.dot(x, m1_ref[...], preferred_element_type=jnp.float32), 0.0
    )                                                                      # (TB, Cr)
    # excite: second projection + sigmoid
    s = jax.nn.sigmoid(
        jnp.dot(h, w2t_ref[...], preferred_element_type=jnp.float32)
    )                                                                      # (TB, C)
    # broadcast each channel scale across its L lanes via expansion matmul
    s_full = jnp.dot(s, exp_ref[...], preferred_element_type=jnp.float32)  # (TB, C*L)
    o_ref[...] = (s_full * x).astype(o_ref.dtype)


def _choose_tb(B, per_sample_bytes, target_bytes, min_grid_steps):
    """Pick a batch-tile size: big blocks, sublane-aligned, several grid steps."""
    if B <= 8:
        return B                                   # one block == full batch dim
    tb = max(8, target_bytes // per_sample_bytes)  # ~target_bytes per block
    tb = min(tb, max(8, B // min_grid_steps))      # keep >= min_grid_steps steps
    tb = max(8, (tb // 8) * 8)                     # sublane multiple of 8
    return int(tb)


def squeeze_excite_1d(x, w1, w2, *, target_block_bytes=2 << 20, min_grid_steps=4):
    """x: (B, C, L); w1: (1, C_red, C); w2: (1, C, C_red) (PyTorch param shapes)."""
    B, C, L = x.shape
    Cr = w1.shape[1]
    CL = C * L

    # Fused mean + first projection:  H = relu(X @ M1),  M1[c*L + l, r] = w1[r, c] / L
    w1t = jnp.transpose(w1[0]).astype(jnp.float32)             # (C, Cr)
    m1 = jnp.repeat(w1t, L, axis=0) * (1.0 / L)                 # (C*L, Cr)
    w2t = jnp.transpose(w2[0]).astype(jnp.float32)              # (Cr, C)

    # Channel -> lane broadcast matrix (MXU-friendly, avoids cross-lane reshapes).
    exp_mat = jnp.repeat(jnp.eye(C, dtype=jnp.float32), L, axis=1)  # (C, C*L)

    per_sample = CL * x.dtype.itemsize
    tb = _choose_tb(B, per_sample, target_block_bytes, min_grid_steps)
    num_blocks = pl.cdiv(B, tb)
    b_pad = num_blocks * tb

    x_flat = x.reshape(B, CL)                                   # lane-dense layout
    if b_pad != B:
        x_flat = jnp.pad(x_flat, ((0, b_pad - B), (0, 0)))

    out_flat = pl.pallas_call(
        se_kernel,
        out_shape=jax.ShapeDtypeStruct((b_pad, CL), x.dtype),
        grid=(num_blocks,),
        in_specs=[
            pl.BlockSpec((tb, CL), lambda b: (b, 0)),           # x tile
            pl.BlockSpec((CL, Cr), lambda b: (0, 0)),           # fused mean + w1.T
            pl.BlockSpec((Cr, C), lambda b: (0, 0)),            # w2.T
            pl.BlockSpec((C, CL), lambda b: (0, 0)),            # expansion matrix
        ],
        out_specs=pl.BlockSpec((tb, CL), lambda b: (b, 0)),
        compiler_params=pltpu.CompilerParams(
            dimension_semantics=("parallel",),
        ),
    )(x_flat, m1, w2t, exp_mat)

    return out_flat[:B].reshape(B, C, L)


def squeeze_excite_1d_ref(x, w1, w2):
    """Pure-JAX reference mirroring the PyTorch forward exactly."""
    z = jnp.mean(x, axis=2, keepdims=True)                      # (B, C, 1)
    intermed = jax.nn.relu(jnp.matmul(w1, z))                   # (B, C_red, 1)
    s = jax.nn.sigmoid(jnp.matmul(w2, intermed))                # (B, C, 1)
    return s * x


if __name__ == "__main__":
    # Module config: channels=32, reduction=16 -> channels_reduced=2.
    # B=64 keeps shapes small (~128 KB) while exercising multi-sample blocks
    # and several parallel grid steps.
    B, C, L = 64, 32, 16
    reduction = 16
    Cr = C // reduction

    key = jax.random.PRNGKey(0)
    kx, kw1, kw2 = jax.random.split(key, 3)

    x = jax.random.normal(kx, (B, C, L), dtype=jnp.float32)
    # Deterministic "torch.randn"-style parameter init (with the unsqueeze(0)).
    w1 = jax.random.normal(kw1, (Cr, C), dtype=jnp.float32)[None]   # (1, Cr, C)
    w2 = jax.random.normal(kw2, (C, Cr), dtype=jnp.float32)[None]   # (1, C, Cr)

    out = squeeze_excite_1d(x, w1, w2)
    out = jax.block_until_ready(out)

    ref = squeeze_excite_1d_ref(x, w1, w2)
    assert out.shape == (B, C, L)
    assert jnp.allclose(out, ref, atol=1e-4, rtol=1e-4), "mismatch vs reference"

    print("KERNEL_OK")
</pallas_src>

<mosaic_0001>
module attributes {stable_mosaic.version = 11 : i64} {
  func.func @se_kernel(%arg0: i32, %arg1: memref<16x512xf32, #tpu.memory_space<vmem>>, %arg2: memref<512x2xf32, #tpu.memory_space<vmem>>, %arg3: memref<2x32xf32, #tpu.memory_space<vmem>>, %arg4: memref<32x512xf32, #tpu.memory_space<vmem>>, %arg5: memref<16x512xf32, #tpu.memory_space<vmem>>) attributes {dimension_semantics = [#tpu.dimension_semantics<parallel>], iteration_bounds = array<i64: 4>, scalar_prefetch = 0 : i64, scratch_operands = 0 : i64, tpu.core_type = #tpu.core_type<tc>, window_params = [{transform_indices = @transform_0, window_bounds = array<i64: 16, 512>}, {pipeline_mode = #tpu.pipeline_mode<synchronous>, transform_indices = @transform_1, window_bounds = array<i64: 512, 2>}, {pipeline_mode = #tpu.pipeline_mode<synchronous>, transform_indices = @transform_2, window_bounds = array<i64: 2, 32>}, {pipeline_mode = #tpu.pipeline_mode<synchronous>, transform_indices = @transform_3, window_bounds = array<i64: 32, 512>}, {transform_indices = @transform_4, window_bounds = array<i64: 16, 512>}]} {
    %c0 = arith.constant 0 : index
    %c0_0 = arith.constant 0 : index
    %0 = vector.load %arg1[%c0, %c0_0] : memref<16x512xf32, #tpu.memory_space<vmem>>, vector<16x512xf32>
    %c0_1 = arith.constant 0 : index
    %c0_2 = arith.constant 0 : index
    %1 = vector.load %arg2[%c0_1, %c0_2] : memref<512x2xf32, #tpu.memory_space<vmem>>, vector<512x2xf32>
    %cst = arith.constant dense<0.000000e+00> : vector<16x2xf32>
    %2 = tpu.matmul %0, %1, %cst {dimension_numbers = #tpu.dot_dimension_numbers<[1], [0], [0], [1], [0, 0, 1, 1], [], []>} : vector<16x512xf32>, vector<512x2xf32>, vector<16x2xf32> -> vector<16x2xf32>
    %cst_3 = arith.constant 0.000000e+00 : f32
    %3 = vector.broadcast %cst_3 : f32 to vector<16x2xf32>
    %4 = arith.maximumf %2, %3 : vector<16x2xf32>
    %c0_4 = arith.constant 0 : index
    %c0_5 = arith.constant 0 : index
    %5 = vector.load %arg3[%c0_4, %c0_5] : memref<2x32xf32, #tpu.memory_space<vmem>>, vector<2x32xf32>
    %cst_6 = arith.constant dense<0.000000e+00> : vector<16x32xf32>
    %6 = tpu.matmul %4, %5, %cst_6 {dimension_numbers = #tpu.dot_dimension_numbers<[1], [0], [0], [1], [0, 0, 1, 1], [], []>} : vector<16x2xf32>, vector<2x32xf32>, vector<16x32xf32> -> vector<16x32xf32>
    %7 = arith.negf %6 : vector<16x32xf32>
    %8 = math.exp %7 : vector<16x32xf32>
    %cst_7 = arith.constant 1.000000e+00 : f32
    %9 = vector.broadcast %cst_7 : f32 to vector<16x32xf32>
    %10 = arith.addf %9, %8 : vector<16x32xf32>
    %11 = arith.divf %9, %10 : vector<16x32xf32>
    %c0_8 = arith.constant 0 : index
    %c0_9 = arith.constant 0 : index
    %12 = vector.load %arg4[%c0_8, %c0_9] : memref<32x512xf32, #tpu.memory_space<vmem>>, vector<32x512xf32>
    %cst_10 = arith.constant dense<0.000000e+00> : vector<16x512xf32>
    %13 = tpu.matmul %11, %12, %cst_10 {dimension_numbers = #tpu.dot_dimension_numbers<[1], [0], [0], [1], [0, 0, 1, 1], [], []>} : vector<16x32xf32>, vector<32x512xf32>, vector<16x512xf32> -> vector<16x512xf32>
    %14 = arith.mulf %13, %0 : vector<16x512xf32>
    %c0_11 = arith.constant 0 : index
    %c0_12 = arith.constant 0 : index
    %15 = vector.load %arg5[%c0_11, %c0_12] : memref<16x512xf32, #tpu.memory_space<vmem>>, vector<16x512xf32>
    tpu.vector_store %arg5[%c0_11, %c0_12], %14 {strides = array<i32>} : memref<16x512xf32, #tpu.memory_space<vmem>>, vector<16x512xf32>,
    return
  }
  func.func @transform_0(%arg0: i32) -> (i32, i32) {
    %c0_i32 = arith.constant 0 : i32
    %c0_i32_0 = arith.constant 0 : i32
    return %arg0, %c0_i32 : i32, i32
  }
  func.func @transform_1(%arg0: i32) -> (i32, i32) {
    %c0_i32 = arith.constant 0 : i32
    %c0_i32_0 = arith.constant 0 : i32
    %c0_i32_1 = arith.constant 0 : i32
    return %c0_i32, %c0_i32_0 : i32, i32
  }
  func.func @transform_2(%arg0: i32) -> (i32, i32) {
    %c0_i32 = arith.constant 0 : i32
    %c0_i32_0 = arith.constant 0 : i32
    %c0_i32_1 = arith.constant 0 : i32
    return %c0_i32, %c0_i32_0 : i32, i32
  }
  func.func @transform_3(%arg0: i32) -> (i32, i32) {
    %c0_i32 = arith.constant 0 : i32
    %c0_i32_0 = arith.constant 0 : i32
    %c0_i32_1 = arith.constant 0 : i32
    return %c0_i32, %c0_i32_0 : i32, i32
  }
  func.func @transform_4(%arg0: i32) -> (i32, i32) {
    %c0_i32 = arith.constant 0 : i32
    %c0_i32_0 = arith.constant 0 : i32
    return %arg0, %c0_i32 : i32, i32
  }
}

</mosaic_0001>

<bundles_post_ra>
// kernel: tpu_custom_call.1
= control target key start
LH: loop header
LB: loop body
LE: loop exit
PB: predicated region body
PF: predicated region fallthrough
CT: control target
= control target key end

     0   :  { %9 = vsyncpa [#allocation3], 0  ;;  %s1536_s0 = inlined_call_operand.vmem [shape: f32[64,512], index: 0, kind: input, shape index: {}]   ;;  %s1537_s1 = inlined_call_operand.vmem [shape: f32[512,2], index: 1, kind: input, shape index: {}]   ;;  %s1538_s2 = inlined_call_operand.vmem [shape: f32[2,32], index: 2, kind: input, shape index: {}]   ;;  %s1539_s3 = inlined_call_operand.vmem [shape: f32[32,512], index: 3, kind: input, shape index: {}]   ;;  %s1540_s4 = inlined_call_operand.hbm [shape: f32[64,512], index: 4, kind: output, shape index: {}]  }
   0x1   :  { %11 = vsyncpa [#allocation3 + $0x1], 0  ;;  %s1132_s15 = smov 0   ;;  %s1134_s16 = smov 0  }
   0x2   :  { %s1136_s17 = smov 0   ;;  %s1138_s18 = smov 0  }
   0x3 LB: > { %s1153_s19 = sadd.s32 4294967295, %s1101_s18   ;;  %s795_s20 = sadd.s32 4294967294, %s1101_s18   ;;  %s1101_s18 = sphi %s1138_s18, %s1547_s18   ;;  %s1097_s17 = sphi %s1136_s17, %s1546_s17   ;;  %s1093_s16 = sphi %s1134_s16, %s1545_s16   ;;  %s1089_s15 = sphi %s1132_s15, %s1544_s15  }
   0x4   : > { %s1157_s21 = sadd.s32 1, %s1101_s18   ;;  %s113_s22 = sadd.s32 1, %s1097_s17 }
   0x5   : > { %s110_s23 = ssub.s32 %s1101_s18, %s1157_s21  ;;  %p123_p0 = scmp.ne.s32.totalorder %s1097_s17, %s1093_s16 }
   0x6   : > { %p111_p1 = scmp.eq.s32.totalorder %s110_s23, 0  ;;  %p124_p2 = scmp.eq.s32.totalorder %s1153_s19, 3 }
   0x7   : > { %p129_p3 = scmp.ne.s32.totalorder %s1093_s16, %s1089_s15  ;;  %p130_p4 = scmp.eq.s32.totalorder %s795_s20, 3 }
   0x8   : > { %s1168_s24 = scalar_select %p111_p1, %s1097_s17, %s113_s22  }
   0x9   : > { %p1170_p5 = por %p124_p2, %p123_p0  ;;  %p1174_p6 = por %p130_p4, %p129_p3 }
   0xa   : > { %p798_p7 = scmp.ge.s32.totalorder %s1101_s18, 1  ;;  %p167_p8 = scmp.lt.s32.totalorder %s1101_s18, 5 }
   0xc   : > { %p168_p9 = pnand %p798_p7, %p167_p8 }
   0xd   : > { %v226_v0 = vld [vmem:[%s1537_s1 + $0x80] sm:$0xff] (!%p168_p9)  ;;  %v227_v1 = vld [vmem:[%s1537_s1 + $0x88] sm:$0xff] (!%p168_p9)  ;;  %v228_v11 = vld [vmem:[%s1537_s1 + $0x90] sm:$0xff] (!%p168_p9)  ;;  %s800_s14 = sshll.u32 (!%p168_p9), %s1153_s19, 1  ;;  %vm434_vm0 = vcmask (!%p168_p9), 1041408   ;;  %vm427_vm1 = vcmask (!%p168_p9), 15360  }
   0xe   : > { %171 = sbr.rel (%p168_p9) target bundleno = 750 (0x2ee), region = 36  ;;  %v258_v2 = vld [vmem:[%s1537_s1 + $0x180] sm:$0xff] (!%p168_p9)  ;;  %v905_v3 = vpack.c.bf16 (!%p168_p9), %v227_v1, %v226_v0  ;;  %v259_v4 = vld [vmem:[%s1537_s1 + $0x188] sm:$0xff] (!%p168_p9)  ;;  %v229_v13 = vld [vmem:[%s1537_s1 + $0x98] sm:$0xff] (!%p168_p9)  ;;  %p1255_p10 = scmp.lt.s32.totalorder (!%p168_p9), %s800_s14, 7  ;;  %vm541_vm2 = vcmask (!%p168_p9), 261120  }
   0xf   : > { %v210_v5 = vld [vmem:[%s1537_s1] sm:$0xff] (!%p168_p9)  ;;  %v211_v6 = vld [vmem:[%s1537_s1 + $0x8] sm:$0xff] (!%p168_p9)  ;;  %v937_v7 = vpack.c.bf16 (!%p168_p9), %v259_v4, %v258_v2  ;;  %v260_v14 = vld [vmem:[%s1537_s1 + $0x190] sm:$0xff] (!%p168_p9)  ;;  %v909_v16 = vpack.c.bf16 (!%p168_p9), %v229_v13, %v228_v11  ;;  %s191_s30 = sand.u32 (!%p168_p9), 1, %s1093_s16   ;;  %s820_s6 = sshll.u32 (!%p168_p9), %s1153_s19, 10 }
  0x10   : > { %v907_v8 = vpack.c.bf16 (!%p168_p9), %v211_v6, %v210_v5  ;;  %v242_v9 = vld [vmem:[%s1537_s1 + $0x100] sm:$0xff] (!%p168_p9)  ;;  %v243_v10 = vld [vmem:[%s1537_s1 + $0x108] sm:$0xff] (!%p168_p9)  ;;  %906 = vmatprep.subr.bf16.mxu0 (!%p168_p9), %v905_v3  ;;  %v261_v15 = vld [vmem:[%s1537_s1 + $0x198] sm:$0xff] (!%p168_p9)  ;;  %s799_s5 = sshll.u32 (!%p168_p9), %s191_s30, 6  ;;  %s1488_s12 = scalar_lea.hbm (!%p168_p9), %s1540_s4, %s820_s6 }
  0x11   : > { %v939_v12 = vpack.c.bf16 (!%p168_p9), %v243_v10, %v242_v9  ;;  %938 = vmatprep.subr.bf16.mxu1 (!%p168_p9), %v937_v7  ;;  %v941_v17 = vpack.c.bf16 (!%p168_p9), %v261_v15, %v260_v14  ;;  %v212_v18 = vld [vmem:[%s1537_s1 + $0x10] sm:$0xff] (!%p168_p9)  ;;  %v213_v19 = vld [vmem:[%s1537_s1 + $0x18] sm:$0xff] (!%p168_p9)  ;;  %v230_v23 = vld [vmem:[%s1537_s1 + $0xa0] sm:$0xff] (!%p168_p9)  ;;  %s1495_s19 = scalar_lea.sflag (!%p168_p9), [#allocation3], %s191_s30  ;;  %s1104_s20 = smov (!%p168_p9), [#allocation2]  }
  0x12   : > { %908 = vmatpush3.bf16.msra.mxu0 (!%p168_p9), %v907_v8  ;;  %v244_v20 = vld [vmem:[%s1537_s1 + $0x110] sm:$0xff] (!%p168_p9)  ;;  %v911_v21 = vpack.c.bf16 (!%p168_p9), %v213_v19, %v212_v18  ;;  %v245_v22 = vld [vmem:[%s1537_s1 + $0x118] sm:$0xff] (!%p168_p9)  ;;  %v231_v24 = vld [vmem:[%s1537_s1 + $0xa8] sm:$0xff] (!%p168_p9)  ;;  %s1043_s22 = sshll.u32 (!%p168_p9), %s1104_s20, 4  ;;  %s1044_s22 = int_to_ptr.vmem [resolvable:$false] %s1043_s22 }
  0x13   : > { %940 = vmatpush3.bf16.msra.mxu1 (!%p168_p9), %v939_v12  ;;  %910 = vmatprep.subr.bf16.mxu0 (!%p168_p9), %v909_v16  ;;  %v943_v25 = vpack.c.bf16 (!%p168_p9), %v245_v22, %v244_v20  ;;  %v913_v26 = vpack.c.bf16 (!%p168_p9), %v231_v24, %v230_v23  ;;  %v262_v27 = vld [vmem:[%s1537_s1 + $0x1a0] sm:$0xff] (!%p168_p9)  ;;  %v263_v28 = vld [vmem:[%s1537_s1 + $0x1a8] sm:$0xff] (!%p168_p9)  ;;  %v232_v35 = vld [vmem:[%s1537_s1 + $0xb0] sm:$0xff] (!%p168_p9)  ;;  %s1045_s23 = scalar_lea.vmem (!%p168_p9), %s1044_s22, 2048 }
  0x14   : > { %942 = vmatprep.subr.bf16.mxu1 (!%p168_p9), %v941_v17  ;;  %v214_v29 = vld [vmem:[%s1537_s1 + $0x20] sm:$0xff] (!%p168_p9)  ;;  %v945_v30 = vpack.c.bf16 (!%p168_p9), %v263_v28, %v262_v27  ;;  %v215_v31 = vld [vmem:[%s1537_s1 + $0x28] sm:$0xff] (!%p168_p9)  ;;  %v233_v36 = vld [vmem:[%s1537_s1 + $0xb8] sm:$0xff] (!%p168_p9) }
  0x15   : > { %v246_v32 = vld [vmem:[%s1537_s1 + $0x120] sm:$0xff]  ;;  %v247_v33 = vld [vmem:[%s1537_s1 + $0x128] sm:$0xff]  ;;  %v915_v34 = vpack.c.bf16 %v215_v31, %v214_v29  ;;  %v264_v37 = vld [vmem:[%s1537_s1 + $0x1b0] sm:$0xff]  ;;  %v917_v39 = vpack.c.bf16 %v233_v36, %v232_v35  ;;  %s1549_s14 = smov (!%p1255_p10, %s800_s14), 7 }
  0x16   : > { %912 = vmatpush3.bf16.msra.mxu0 %v911_v21  ;;  %v947_v38 = vpack.c.bf16 %v247_v33, %v246_v32  ;;  %v265_v40 = vld [vmem:[%s1537_s1 + $0x1b8] sm:$0xff]  ;;  %v216_v41 = vld [vmem:[%s1537_s1 + $0x30] sm:$0xff]  ;;  %v234_v46 = vld [vmem:[%s1537_s1 + $0xc0] sm:$0xff]  ;;  %s818_s10 = sshll.u32 %s1549_s14, 5 }
  0x17   : > { %944 = vmatpush3.bf16.msra.mxu1 %v943_v25  ;;  %914 = vmatprep.subr.bf16.mxu0 %v913_v26  ;;  %v217_v42 = vld [vmem:[%s1537_s1 + $0x38] sm:$0xff]  ;;  %v949_v43 = vpack.c.bf16 %v265_v40, %v264_v37  ;;  %v248_v44 = vld [vmem:[%s1537_s1 + $0x130] sm:$0xff]  ;;  %v235_v47 = vld [vmem:[%s1537_s1 + $0xc8] sm:$0xff]  ;;  %s1347_s8 = scalar_lea.vmem %s1536_s0, %s818_s10 }
  0x18   : > { %946 = vmatprep.subr.bf16.mxu1 %v945_v30  ;;  %v249_v45 = vld [vmem:[%s1537_s1 + $0x138] sm:$0xff]  ;;  %v266_v48 = vld [vmem:[%s1537_s1 + $0x1c0] sm:$0xff]  ;;  %v267_v49 = vld [vmem:[%s1537_s1 + $0x1c8] sm:$0xff]  ;;  %v919_v50 = vpack.c.bf16 %v217_v42, %v216_v41  ;;  %v921_v52 = vpack.c.bf16 %v235_v47, %v234_v46 }
  0x19   : > { %v951_v51 = vpack.c.bf16 %v249_v45, %v248_v44  ;;  %v218_v53 = vld [vmem:[%s1537_s1 + $0x40] sm:$0xff]  ;;  %v219_v54 = vld [vmem:[%s1537_s1 + $0x48] sm:$0xff]  ;;  %v953_v56 = vpack.c.bf16 %v267_v49, %v266_v48  ;;  %v236_v58 = vld [vmem:[%s1537_s1 + $0xd0] sm:$0xff] }
  0x1a   : > { %916 = vmatpush3.bf16.msra.mxu0 %v915_v34  ;;  %v250_v55 = vld [vmem:[%s1537_s1 + $0x140] sm:$0xff]  ;;  %v251_v57 = vld [vmem:[%s1537_s1 + $0x148] sm:$0xff]  ;;  %v237_v59 = vld [vmem:[%s1537_s1 + $0xd8] sm:$0xff]  ;;  %v923_v62 = vpack.c.bf16 %v219_v54, %v218_v53 }
  0x1b   : > { %948 = vmatpush3.bf16.msra.mxu1 %v947_v38  ;;  %918 = vmatprep.subr.bf16.mxu0 %v917_v39  ;;  %v268_v60 = vld [vmem:[%s1537_s1 + $0x1d0] sm:$0xff]  ;;  %v269_v61 = vld [vmem:[%s1537_s1 + $0x1d8] sm:$0xff]  ;;  %v955_v63 = vpack.c.bf16 %v251_v57, %v250_v55  ;;  %v925_v0 = vpack.c.bf16 %v237_v59, %v236_v58  ;;  %v238_v6 = vld [vmem:[%s1537_s1 + $0xe0] sm:$0xff] }
  0x1c   : > { %950 = vmatprep.subr.bf16.mxu1 %v949_v43  ;;  %v220_v1 = vld [vmem:[%s1537_s1 + $0x50] sm:$0xff]  ;;  %v221_v2 = vld [vmem:[%s1537_s1 + $0x58] sm:$0xff]  ;;  %v957_v4 = vpack.c.bf16 %v269_v61, %v268_v60  ;;  %v239_v7 = vld [vmem:[%s1537_s1 + $0xe8] sm:$0xff] }
  0x1d   : > { %v252_v3 = vld [vmem:[%s1537_s1 + $0x150] sm:$0xff]  ;;  %v253_v5 = vld [vmem:[%s1537_s1 + $0x158] sm:$0xff]  ;;  %v270_v8 = vld [vmem:[%s1537_s1 + $0x1e0] sm:$0xff]  ;;  %v927_v10 = vpack.c.bf16 %v221_v2, %v220_v1  ;;  %v929_v14 = vpack.c.bf16 %v239_v7, %v238_v6 }
  0x1e   : > { %920 = vmatpush3.bf16.msra.mxu0 %v919_v50  ;;  %v271_v9 = vld [vmem:[%s1537_s1 + $0x1e8] sm:$0xff]  ;;  %v222_v11 = vld [vmem:[%s1537_s1 + $0x60] sm:$0xff]  ;;  %v959_v13 = vpack.c.bf16 %v253_v5, %v252_v3  ;;  %v1368_v17 = vld [vmem:[%s1347_s8 + $0x18] sm:$0xff] }
  0x1f   : > { %952 = vmatpush3.bf16.msra.mxu1 %v951_v51  ;;  %922 = vmatprep.subr.bf16.mxu0 %v921_v52  ;;  %v223_v12 = vld [vmem:[%s1537_s1 + $0x68] sm:$0xff]  ;;  %v254_v15 = vld [vmem:[%s1537_s1 + $0x160] sm:$0xff]  ;;  %v961_v18 = vpack.c.bf16 %v271_v9, %v270_v8  ;;  %v240_v20 = vld [vmem:[%s1537_s1 + $0xf0] sm:$0xff] }
  0x20   : > { %954 = vmatprep.subr.bf16.mxu1 %v953_v56  ;;  %v1365_v16 = vld [vmem:[%s1347_s8 + $0x8] sm:$0xff]  ;;  %v241_v21 = vld [vmem:[%s1537_s1 + $0xf8] sm:$0xff]  ;;  %v272_v22 = vld [vmem:[%s1537_s1 + $0x1f0] sm:$0xff]  ;;  %413 = vmatprep.mubr.f32.mxu1 %v1368_v17  ;;  %v931_v24 = vpack.c.bf16 %v223_v12, %v222_v11 }
  0x21   : > { %v255_v19 = vld [vmem:[%s1537_s1 + $0x168] sm:$0xff]  ;;  %338 = vmatprep.mubr.f32.mxu0 %v1365_v16  ;;  %v273_v23 = vld [vmem:[%s1537_s1 + $0x1f8] sm:$0xff]  ;;  %v933_v26 = vpack.c.bf16 %v241_v21, %v240_v20  ;;  %v224_v27 = vld [vmem:[%s1537_s1 + $0x70] sm:$0xff] }
  0x22   : > { %924 = vmatpush3.bf16.msra.mxu0 %v923_v62  ;;  %v963_v25 = vpack.c.bf16 %v255_v19, %v254_v15  ;;  %v225_v28 = vld [vmem:[%s1537_s1 + $0x78] sm:$0xff]  ;;  %v965_v29 = vpack.c.bf16 %v273_v23, %v272_v22  ;;  %v256_v30 = vld [vmem:[%s1537_s1 + $0x170] sm:$0xff]  ;;  %v1400_v34 = vld [vmem:[%s1347_s8] sm:$0xff] }
  0x23   : > { %956 = vmatpush3.bf16.msra.mxu1 %v955_v63  ;;  %926 = vmatprep.subr.bf16.mxu0 %v925_v0  ;;  %v257_v31 = vld [vmem:[%s1537_s1 + $0x178] sm:$0xff]  ;;  %v935_v32 = vpack.c.bf16 %v225_v28, %v224_v27  ;;  %v1403_v35 = vld [vmem:[%s1347_s8 + $0x10] sm:$0xff]  ;;  %v1406_v36 = vld [vmem:[%s1347_s8 + $0x28] sm:$0xff]  ;;  %v1103_v0 = vmov 0.0  }
  0x24   : > { %958 = vmatprep.subr.bf16.mxu1 %v957_v4  ;;  %v967_v33 = vpack.c.bf16 %v257_v31, %v256_v30  ;;  %v1409_v37 = vld [vmem:[%s1347_s8 + $0x38] sm:$0xff]  ;;  %v1415_v38 = vld [vmem:[%s1347_s8 + $0x20] sm:$0xff]  ;;  %v1419_v39 = vld [vmem:[%s1347_s8 + $0x30] sm:$0xff]  ;;  %s193_s8 = scalar_lea.vmem [#allocation2], %s799_s5 }
  0x25   : > { %v426_v40 = vld [vmem:[%s1538_s2] sm:$0x3]  ;;  %v526_v57 = vld [vmem:[%s1539_s3 + $0x8] sm:$0xff]  ;;  %v528_v62 = vld [vmem:[%s1539_s3 + $0x18] sm:$0xff]  ;;  %s733_s7 = sshll.u32 %s193_s8, 4  ;;  %s1490_s7 = int_to_ptr.vmem [resolvable:$true] %s733_s7 }
  0x26   : > { %928 = vmatpush3.bf16.msra.mxu0 %v927_v10  ;;  %v530_v58 = vld [vmem:[%s1539_s3 + $0x28] sm:$0xff]  ;;  %v525_v59 = vld [vmem:[%s1539_s3] sm:$0xff]  ;;  %v532_v63 = vld [vmem:[%s1539_s3 + $0x38] sm:$0xff]  ;;  %s1039_s13 = scalar_lea.vmem %s1490_s7, 1024  ;;  %p1046_p0 = scmp.lt.s32.totalorder %s1490_s7, %s1044_s22 }
  0x27   : > { %960 = vmatpush3.bf16.msra.mxu1 %v959_v13  ;;  %930 = vmatprep.subr.bf16.mxu0 %v929_v14  ;;  %v969_v60 = vpack.c.bf16 %v530_v58, %v526_v57  ;;  %v529_v61 = vld [vmem:[%s1539_s3 + $0x20] sm:$0xff]  ;;  %v977_v2 = vpack.c.bf16 %v532_v63, %v528_v62  ;;  %v527_v3 = vld [vmem:[%s1539_s3 + $0x10] sm:$0xff]  ;;  %v534_v5 = vld [vmem:[%s1539_s3 + $0x48] sm:$0xff]  ;;  %p1040_p11 = scmp.ne.s32.totalorder %s1490_s7, %s1039_s13  ;;  %p1047_p1 = scmp.lt.s32.totalorder %s1045_s23, %s1039_s13 }
  0x28   : > { %962 = vmatprep.subr.bf16.mxu1 %v961_v18  ;;  %v971_v1 = vpack.c.bf16 %v529_v61, %v525_v59  ;;  %v531_v4 = vld [vmem:[%s1539_s3 + $0x30] sm:$0xff]  ;;  %v538_v7 = vld [vmem:[%s1539_s3 + $0x68] sm:$0xff]  ;;  %v533_v8 = vld [vmem:[%s1539_s3 + $0x40] sm:$0xff] }
  0x29   : > { %v979_v6 = vpack.c.bf16 %v531_v4, %v527_v3  ;;  %v537_v9 = vld [vmem:[%s1539_s3 + $0x60] sm:$0xff]  ;;  %v973_v10 = vpack.c.bf16 %v538_v7, %v534_v5  ;;  %v536_v12 = vld [vmem:[%s1539_s3 + $0x58] sm:$0xff]  ;;  %v535_v14 = vld [vmem:[%s1539_s3 + $0x50] sm:$0xff]  ;;  %p1041_p12 = pnand %p1040_p11, %p1170_p5  ;;  %p1048_p2 = por %p1047_p1, %p1046_p0 }
  0x2a   : > { %932 = vmatpush3.bf16.msra.mxu0 %v931_v24  ;;  %v975_v11 = vpack.c.bf16 %v537_v9, %v533_v8  ;;  %v540_v13 = vld [vmem:[%s1539_s3 + $0x78] sm:$0xff]  ;;  %v539_v18 = vld [vmem:[%s1539_s3 + $0x70] sm:$0xff] }
  0x2b   : > { %964 = vmatpush3.bf16.msra.mxu1 %v963_v25  ;;  %934 = vmatprep.subr.bf16.mxu0 %v933_v26  ;;  %v981_v15 = vpack.c.bf16 %v540_v13, %v536_v12  ;;  %v983_v19 = vpack.c.bf16 %v539_v18, %v535_v14  ;;  %p1042_p13 = pneg %p1041_p12 }
  0x2c   : > { %966 = vmatprep.subr.bf16.mxu1 %v965_v29 }
  0x2d   : > { %p1049_p3 = pnand %p1048_p2, %p1042_p13 }
  0x2e   : > { %936 = vmatpush3.bf16.msra.mxu0 %v935_v32 }
  0x2f   : > { %968 = vmatpush3.bf16.msra.mxu1 %v967_v33  ;;  %900 = vmatprep.subr.msk.mxu0 %vm434_vm0, %v426_v40 }
  0x30   : > { %970 = vmatprep.subr.bf16.mxu1 %v969_v60 }
  0x31   : > { %339 = vmatmul.mubr.f32.vlgmr.msra.gmra.mrb[0].mxu0 %v1400_v34 }
  0x32   : > { %414 = vmatmul.mubr.f32.vlgmr.msra.gmra.mrb[0].mxu1 %v1403_v35  ;;  %343 = vmatprep.mubr.f32.mxu0 %v1406_v36 }
  0x33   : > { %418 = vmatprep.mubr.f32.mxu1 %v1409_v37  ;;  %901 = vmatpush3.msk.msra.mxu0 %vm434_vm0, %v426_v40 }
  0x34   : > { %972 = vmatpush1.bf16.msra.mxu1 %v971_v1  ;;  %978 = vmatprep.subr.bf16.mxu0 %v977_v2 }
  0x35   : > { %344 = vmatmul.mubr.f32.gmra.mrb[2].mxu0 %v1415_v38  ;;  %974 = vmatprep.subr.bf16.mxu1 %v973_v10 }
  0x36   : > { %419 = vmatmul.mubr.f32.gmra.mrb[2].mxu1 %v1419_v39 }
  0x37   : > { %612 = vmatprep.mubr.f32.mxu1 %v1103_v0 }
  0x38   : > { %976 = vmatpush1.bf16.msra.mxu1 %v975_v11 }
  0x39   : > { %985 = vmatprep.subr.bf16.mxu1 %v977_v2 }
 0x104   : > { %v853_v41 = vpop.f32.mrb[0].mxu0 }
 0x105   : > { %v891_v42 = vpop.f32.mrb[0].mxu1  ;;  %v854_v43 = vpop.f32.mrb[1].mxu0 }
 0x106   : > { %v855_v44 = vadd.f32 %v854_v43, %v853_v41  ;;  %v892_v45 = vpop.f32.mrb[1].mxu1 }
 0x107   : > { %v893_v46 = vadd.f32 %v892_v45, %v891_v42 }
 0x108   : > { %v856_v47 = vpop.f32.mrb[2].mxu0 }
 0x109   : > { %v416_v48 = vadd.f32 %v893_v46, %v855_v44  ;;  %v894_v49 = vpop.f32.mrb[2].mxu1  ;;  %v857_v50 = vpop.f32.mrb[3].mxu0 }
 0x10a   : > { %v858_v51 = vadd.f32 %v857_v50, %v856_v47  ;;  %v895_v52 = vpop.f32.mrb[3].mxu1 }
 0x10b   : > { %v424_v53 = vmax.f32 %v416_v48, 0.0  ;;  %v896_v54 = vadd.f32 %v895_v52, %v894_v49 }
 0x10d   : > { %v421_v55 = vadd.f32 %v896_v54, %v858_v51  ;;  %902 = vmatprep.mubr.msk.f32.mxu0 %vm427_vm1, %v424_v53 }
 0x10f   : > { %v425_v56 = vmax.f32 %v421_v55, 0.0 }
 0x111   : > { %903 = vmatmul.mubr.msk.f32.vlgmr.msra.gmra.mrb[4].mxu0 %vm427_vm1, %v425_v56 }
 0x112   : > { %689 = vmatprep.mubr.f32.mxu0 %v1103_v0  ;;  %980 = vmatpush1.bf16.msra.mxu0 %v979_v6 }
 0x113   : > { %982 = vmatprep.subr.bf16.mxu0 %v981_v15 }
 0x116   : > { %984 = vmatpush1.bf16.msra.mxu0 %v983_v19 }
 0x1e4   : > { %v904_v20 = vpop.f32.mrb[4].mxu0 }
 0x1e5   : > { %v807_v21 = vmul.f32 -1.442695, %v904_v20  ;;  %v504_v22 = vpop.f32.mrb[5].mxu0 }
 0x1e6   : > { %v806_v23 = vmul.f32 -1.442695, %v504_v22 }
 0x1e7   : > { %1031 = vpow2.f32 %v807_v21 }
 0x1e8   : > { %1033 = vpow2.f32 %v806_v23 }
 0x1f1   : > { %v1032_v24 = vpop.eup %1031 }
 0x1f2   : > { %v1034_v25 = vpop.eup %1033  ;;  %v520_v27 = vadd.f32 1.0, %v1032_v24 }
 0x1f3   : > { %v519_v26 = vadd.f32 1.0, %v1034_v25 }
 0x1f5   : > { %1035 = vrcp.f32 %v519_v26 }
 0x1f6   : > { %1037 = vrcp.f32 %v520_v27 }
 0x1ff   : > { %v1036_v28 = vpop.eup %1035 }
 0x200   : > { %808 = vmatmul.mubr.msk.f32.vlgmr.msra.gmra.mrb[4].mxu1 %vm541_vm2, %v1036_v28  ;;  %810 = vmatmul.mubr.msk.f32.vlgmr.msra.gmra.mrb[6].mxu0 %vm541_vm2, %v1036_v28  ;;  %v1038_v29 = vpop.eup %1037 }
 0x201   : > { %987 = vmatpush1.bf16.msra.mxu1 %v979_v6  ;;  %618 = vmatprep.mubr.f32.mxu1 %v1103_v0 }
 0x202   : > { %986 = vmatprep.subr.bf16.mxu1 %v981_v15 }
 0x204   : > { %809 = vmatmul.mubr.msk.f32.gmra.mrb[6].mxu1 %vm541_vm2, %v1038_v29 }
 0x205   : > { %988 = vmatpush1.bf16.msra.mxu1 %v983_v19  ;;  %695 = vmatprep.mubr.f32.mxu1 %v1103_v0 }
 0x208   : > { %811 = vmatmul.mubr.msk.f32.vlgmr.msra.gmra.mrb[8].mxu1 %vm541_vm2, %v1038_v29 }
 0x2d3   : > { %v614_v30 = vpop.f32.mrb[4].mxu1  ;;  %v691_v31 = vpop.f32.mrb[6].mxu0 }
 0x2d4   : > { %v702_v32 = vmul.f32 %v614_v30, %v1400_v34  ;;  %v704_v33 = vmul.f32 %v691_v31, %v1403_v35  ;;  %v616_v40 = vpop.f32.mrb[5].mxu1  ;;  %v693_v41 = vpop.f32.mrb[7].mxu0 }
 0x2d5   : > { %v703_v42 = vmul.f32 %v616_v40, %v1365_v16  ;;  %v705_v43 = vmul.f32 %v693_v41, %v1368_v17 }
 0x2d6   : > { %710 = vst [vmem:[%s193_s8] sm:$0xff] %v702_v32  ;;  %712 = vst [vmem:[%s193_s8 + $0x10] sm:$0xff] %v704_v33 }
 0x2d7   : > { %711 = vst [vmem:[%s193_s8 + $0x8] sm:$0xff] %v703_v42  ;;  %713 = vst [vmem:[%s193_s8 + $0x18] sm:$0xff] %v705_v43  ;;  %v620_v44 = vpop.f32.mrb[6].mxu1 }
 0x2d8   : > { %v706_v45 = vmul.f32 %v620_v44, %v1415_v38  ;;  %v622_v46 = vpop.f32.mrb[7].mxu1 }
 0x2d9   : > { %v707_v34 = vmul.f32 %v622_v46, %v1406_v36 }
 0x2da   : > { %714 = vst [vmem:[%s193_s8 + $0x20] sm:$0xff] %v706_v45 }
 0x2db   : > { %715 = vst [vmem:[%s193_s8 + $0x28] sm:$0xff] %v707_v34  ;;  %v697_v16 = vpop.f32.mrb[8].mxu1 }
 0x2dc   : > { %v708_v17 = vmul.f32 %v697_v16, %v1419_v39  ;;  %v699_v35 = vpop.f32.mrb[9].mxu1 }
 0x2dd   : > { %v709_v36 = vmul.f32 %v699_v35, %v1409_v37 }
 0x2de   : > { %716 = vst [vmem:[%s193_s8 + $0x30] sm:$0xff] %v708_v17 }
 0x2df   : > { %717 = vst [vmem:[%s193_s8 + $0x38] sm:$0xff] %v709_v36 }
 0x2e0   : > { %1052 = shalt.err (!%p1049_p3)
}
 0x2e1   : > { %s1053_s14 = scalar_lea.hbm %s1488_s12, 1024  ;;  %s1057_s28 = scalar_lea.hbm %s1540_s4, 4096 }
 0x2e2   : > { %p1054_p4 = scmp.ne.s32.totalorder %s1488_s12, %s1053_s14  ;;  %p1058_p9 = scmp.lt.u32.totalorder %s1488_s12, %s1540_s4 }
 0x2e3   : > { %p1059_p10 = scmp.lt.u32.totalorder %s1057_s28, %s1053_s14  ;;  %p1061_p12 = scmp.lt.u32.totalorder %s1053_s14, %s1488_s12 }
 0x2e4   : > { %p1055_p7 = pnand %p1054_p4, %p1170_p5 }
 0x2e5   : > { %p1060_p11 = por %p1059_p10, %p1058_p9 }
 0x2e6   : > { %p1056_p8 = pneg %p1055_p7 }
 0x2e7   : > { %p1062_p13 = por %p1061_p12, %p1060_p11 }
 0x2e9   : > { %p1063_p0 = pnand %p1062_p13, %p1056_p8 }
 0x2eb   : > { %1066 = shalt.err (!%p1063_p0)
}
 0x2ec   : > { %s1105_s5 = smov 512   ;;  %s1106_s8 = smov 32  }
 0x2ed   : > { %989 = dma.vmem_to_hbm [thread:$0]  (%p1170_p5), %s1490_s7, 1024, %s1488_s12, %s1495_s19, %s1105_s5, %s1105_s5, %s1106_s8  }
 0x2ee PF: > { %p995_p1 = scmp.ge.s32.totalorder %s1101_s18, 2  ;;  %s748_s6 = sand.u32 1, %s1089_s15  }
 0x2ef   : > { %s749_s9 = scalar_lea.sflag [#allocation3], %s748_s6 }
 0x2f0   : > { %p992_p2 = pnand %p995_p1, %p1174_p6 }
 0x2f2   : > { %1084 = dma.done.wait (!%p992_p2), %s749_s9, 1024  }
 0x2f3   : > { %1086 = vsyncadd (!%p992_p2), %s749_s9, 4294966272  ;;  %p14_p3 = scmp.ge.s32.totalorder %s1157_s21, 6   ;;  %s1544_s15 = smov %s1093_s16 }
 0x2f4   : > { %s1545_s16 = smov %s1097_s17  ;;  %s1546_s17 = smov %s1168_s24 }
 0x2f5   : > { %s1547_s18 = smov %s1157_s21  ;;  %16 = sbr.rel (!%p14_p3) target bundleno = 3 (0x3), region = 71 }
 0x2fc   :  { %754 = vsyncpa [#allocation3], 1 }
 0x2fd   :  { %756 = vsyncpa [#allocation3 + $0x1], 1 }

</bundles_post_ra>
